<compile_context>
chip_gen: v5e
topology: v5e:2x2
jax: 0.10.0
libtpu: 0.0.40
codegen_flags: <defaults>
</compile_context>

<pallas_src>
import functools

import jax
import jax.numpy as jnp
from jax.experimental import pallas as pl
from jax.experimental.pallas import tpu as pltpu

_MIB = 1024 * 1024
_LANE = 128


def _vmem_capacity_bytes():
    # 128 MiB on v5e/v6e, 64 MiB per TC on v7x; conservative fallback.
    try:
        return int(pltpu.get_tpu_info().vmem_capacity_bytes)
    except Exception:
        return 64 * _MIB


def _vmem_limit_bytes(cap):
    # Raise the scoped VMEM limit above the 16/32 MiB defaults, keep headroom.
    return int(min(3 * cap // 4, 96 * _MIB))


# ----------------------- single resident-block fast path ---------------------

def _centered_single_kernel(x_ref, o_ref, *, inv_n):
    # Re-read the ref for the subtract (streamed from VMEM) instead of binding
    # one upcast f32 temp used twice -> no full-size f32 copy for bf16 inputs.
    total = jnp.sum(x_ref[...].astype(jnp.float32))
    mean = total * inv_n
    o_ref[...] = (x_ref[...].astype(jnp.float32) - mean).astype(o_ref.dtype)


def _centered_single(x2d, n_true, vmem_limit):
    kernel = functools.partial(_centered_single_kernel, inv_n=1.0 / float(n_true))
    return pl.pallas_call(
        kernel,
        out_shape=jax.ShapeDtypeStruct(x2d.shape, x2d.dtype),
        # Whole-array VMEM blocks, no grid -> no per-step bookkeeping.
        in_specs=[pl.BlockSpec(memory_space=pltpu.MemorySpace.VMEM)],
        out_specs=pl.BlockSpec(memory_space=pltpu.MemorySpace.VMEM),
        compiler_params=pltpu.CompilerParams(vmem_limit_bytes=vmem_limit),
    )(x2d)


# ----------------------------- tiled two-pass path ----------------------------

def _partial_sum_kernel(x_ref, psum_ref, *, tm, valid_rows):
    x = x_ref[...].astype(jnp.float32)
    if valid_rows is not None:
        # Ragged last block: rows >= valid_rows hold unspecified pad data.
        row = jax.lax.broadcasted_iota(jnp.int32, x.shape, 0) + pl.program_id(0) * tm
        x = jnp.where(row < valid_rows, x, 0.0)
    psum_ref[...] = jnp.sum(x).reshape(1, 1)


def _subtract_mean_kernel(total_ref, x_ref, o_ref, *, inv_n):
    mean = total_ref[0, 0] * inv_n            # raw total from SMEM, 1/n baked in
    o_ref[...] = (x_ref[...].astype(jnp.float32) - mean).astype(o_ref.dtype)
    # Out-of-bounds rows of the last block are discarded by Pallas write-clipping.


def _centered_tiled(x2d, n_true, tm, vmem_limit):
    r, c = x2d.shape
    n_tiles = -(-r // tm)
    valid_rows = None if r % tm == 0 else r

    # Pass 1: per-tile partial sums on a "parallel" grid (both v7x TCs stream
    # HBM); the tiny (n_tiles,) vector is reduced in the wrapper.
    partials = pl.pallas_call(
        functools.partial(_partial_sum_kernel, tm=tm, valid_rows=valid_rows),
        out_shape=jax.ShapeDtypeStruct((n_tiles, 1), jnp.float32),
        grid=(n_tiles,),
        in_specs=[pl.BlockSpec((tm, c), lambda i: (i, 0))],
        out_specs=pl.BlockSpec((1, 1), lambda i: (i, 0)),
        compiler_params=pltpu.CompilerParams(
            dimension_semantics=("parallel",),
            vmem_limit_bytes=vmem_limit,
        ),
    )(x2d)

    total2d = jnp.sum(partials, dtype=jnp.float32).reshape(1, 1)

    # Pass 2: elementwise subtract; tiles independent -> "parallel".
    return pl.pallas_call(
        functools.partial(_subtract_mean_kernel, inv_n=1.0 / float(n_true)),
        out_shape=jax.ShapeDtypeStruct(x2d.shape, x2d.dtype),
        grid=(n_tiles,),
        in_specs=[
            pl.BlockSpec(memory_space=pltpu.MemorySpace.SMEM),   # raw total
            pl.BlockSpec((tm, c), lambda i: (i, 0)),
        ],
        out_specs=pl.BlockSpec((tm, c), lambda i: (i, 0)),
        compiler_params=pltpu.CompilerParams(
            dimension_semantics=("parallel",),
            vmem_limit_bytes=vmem_limit,
        ),
    )(total2d, x2d)


# ----------------------------------- wrapper ----------------------------------

def centered_layer(x):
    """X - X.mean() (global scalar mean), any shape, matching CenteredLayer.

    Float dtypes only (like the PyTorch module's intended use).
    """
    orig_shape = x.shape
    n = int(x.size)
    if n == 0:
        return x
    itemsize = jnp.dtype(x.dtype).itemsize

    cap = _vmem_capacity_bytes()
    vmem_limit = _vmem_limit_bytes(cap)
    two_tc = cap <= 64 * _MIB          # v7x-sized VMEM => 2 TensorCores/chip

    # Resident 2N no-grid path only while it beats the 3N tiled path:
    #   v7x: tiny gate (no-grid runs on 1 TC -> half the chip's HBM BW).
    #   v5e/v6e: 1 TC anyway -> keep 2N path while in+out fits ~96 MiB VMEM.
    single_gate = (4 * _MIB) if two_tc else (40 * _MIB)

    flat = x.reshape(-1)               # contiguous reshape: free, no copy
    aligned = (n % _LANE == 0)
    if not aligned:
        # Rare ragged fallback: one pad + one final slice.
        # TODO(synk): in-kernel lane-tail masking to make this copy-free too.
        padded_n = -(-n // 1024) * 1024
        flat = jnp.pad(flat, (0, padded_n - n))   # zeros don't perturb the sum
    m = int(flat.size)                  # multiple of 128 (1024 if padded)

    if m * itemsize <= single_gate:
        x2d = flat.reshape(m // _LANE, _LANE)     # lane-dense, copy-free view
        out2d = _centered_single(x2d, n, vmem_limit)
    else:
        # Widest lane-dense column count that divides m -> copy-free reshape.
        tile_c = next(c for c in (2048, 1024, 512, 256, 128) if m % c == 0)
        r = m // tile_c
        x2d = flat.reshape(r, tile_c)
        # ~8 MiB tiles on v7x (4 bufs x 8 <= 48 MiB scoped VMEM), ~16 MiB on
        # v5e/v6e (4 x 16 <= 96 MiB); amortizes ~0.35 us per-grid-step cost.
        target_tile = (8 * _MIB) if two_tc else (16 * _MIB)
        tm = max(8, (target_tile // (tile_c * itemsize)) // 8 * 8)
        if tm >= r:
            tm = r                      # full-dim row block is always legal
        out2d = _centered_tiled(x2d, n, tm, vmem_limit)

    out = out2d.reshape(-1)
    if not aligned:
        out = out[:n]
    return out.reshape(orig_shape)


if __name__ == "__main__":
    key = jax.random.PRNGKey(0)
    k1, k2, k3, k4, k5 = jax.random.split(key, 5)
    vmem_limit = _vmem_limit_bytes(_vmem_capacity_bytes())

    # Small 2-D input (lane-aligned element count).
    x1 = jax.random.normal(k1, (8, 32), dtype=jnp.float32)
    out1 = jax.block_until_ready(centered_layer(x1))
    ref1 = x1 - jnp.mean(x1)
    assert out1.shape == x1.shape and out1.dtype == x1.dtype
    assert jnp.allclose(out1, ref1, atol=1e-5, rtol=1e-5)
    assert abs(float(jnp.mean(out1))) < 1e-5

    # Small 4-D input; CenteredLayer is shape-agnostic (global scalar mean).
    x2 = jax.random.normal(k2, (2, 4, 16, 16), dtype=jnp.float32)
    out2 = jax.block_until_ready(centered_layer(x2))
    assert out2.shape == x2.shape
    assert jnp.allclose(out2, x2 - jnp.mean(x2), atol=1e-5, rtol=1e-5)

    # Ragged element count (n % 128 != 0) -> padded fallback branch.
    x3 = jax.random.normal(k3, (7, 13), dtype=jnp.float32)
    out3 = jax.block_until_ready(centered_layer(x3))
    assert out3.shape == x3.shape
    assert jnp.allclose(out3, x3 - jnp.mean(x3), atol=1e-5, rtol=1e-5)

    # Tiled two-pass path with a ragged row-tile tail (masked pass-1 sum,
    # write-clipped pass-2 store).
    x4 = jax.random.normal(k4, (1000, 512), dtype=jnp.float32)
    out4 = jax.block_until_ready(_centered_tiled(x4, x4.size, 128, vmem_limit))
    assert jnp.allclose(out4, x4 - jnp.mean(x4), atol=1e-5, rtol=1e-5)

    # Tiled two-pass path, row-tile-aligned (no masking branch).
    x5 = jax.random.normal(k5, (512, 512), dtype=jnp.float32)
    out5 = jax.block_until_ready(_centered_tiled(x5, x5.size, 128, vmem_limit))
    assert jnp.allclose(out5, x5 - jnp.mean(x5), atol=1e-5, rtol=1e-5)

    print("KERNEL_OK")
</pallas_src>

<mosaic_0001>
module attributes {stable_mosaic.version = 11 : i64} {
  func.func @_centered_single_kernel(%arg0: memref<2x128xf32, #tpu.memory_space<vmem>>, %arg1: memref<2x128xf32, #tpu.memory_space<vmem>>) attributes {dimension_semantics = [], scalar_prefetch = 0 : i64, scratch_operands = 0 : i64, tpu.core_type = #tpu.core_type<tc>} {
    %c0 = arith.constant 0 : index
    %c0_0 = arith.constant 0 : index
    %0 = vector.load %arg0[%c0, %c0_0] : memref<2x128xf32, #tpu.memory_space<vmem>>, vector<2x128xf32>
    %1 = vector.shape_cast %0 : vector<2x128xf32> to vector<1x2x128xf32>
    %cst = arith.constant dense<0.000000e+00> : vector<1xf32>
    %2 = vector.multi_reduction <add>, %1, %cst [1, 2] : vector<1x2x128xf32> to vector<1xf32>
    %3 = vector.shape_cast %2 : vector<1xf32> to vector<1x1x1xf32>
    %4 = vector.extract %3[0, 0, 0] : f32 from vector<1x1x1xf32>
    %cst_1 = arith.constant 3.906250e-03 : f32
    %5 = arith.mulf %4, %cst_1 : f32
    %c0_2 = arith.constant 0 : index
    %c0_3 = arith.constant 0 : index
    %6 = vector.load %arg0[%c0_2, %c0_3] : memref<2x128xf32, #tpu.memory_space<vmem>>, vector<2x128xf32>
    %7 = vector.broadcast %5 : f32 to vector<2x128xf32>
    %8 = arith.subf %6, %7 : vector<2x128xf32>
    %c0_4 = arith.constant 0 : index
    %c0_5 = arith.constant 0 : index
    %9 = vector.load %arg1[%c0_4, %c0_5] : memref<2x128xf32, #tpu.memory_space<vmem>>, vector<2x128xf32>
    tpu.vector_store %arg1[%c0_4, %c0_5], %8 {strides = array<i32>} : memref<2x128xf32, #tpu.memory_space<vmem>>, vector<2x128xf32>,
    return
  }
}

</mosaic_0001>

<bundles_post_ra>
// kernel: tpu_custom_call.1
= control target key start
LH: loop header
LB: loop body
LE: loop exit
PB: predicated region body
PF: predicated region fallthrough
CT: control target
= control target key end

     0   :  { %6 = vsyncpa [#allocation3], 0  ;;  %s130_s0 = inlined_call_operand.hbm [shape: f32[2,128], index: 0, kind: input, shape index: {}]   ;;  %s131_s1 = inlined_call_operand.hbm [shape: f32[2,128], index: 1, kind: output, shape index: {}]  }
   0x1   :  { %7 = vsyncpa [#allocation4], 0  ;;  %s13_s8 = sshll.u32 %s130_s0, 4  ;;  %s112_s9 = smov [#allocation2]   ;;  %s14_s8 = int_to_ptr.hbm [resolvable:$true] %s13_s8 }
   0x2   :  { %s15_s10 = sshll.u32 %s112_s9, 4  ;;  %s16_s10 = int_to_ptr.vmem [resolvable:$true] %s15_s10 }
   0x3   :  { %18 = dma.hbm_to_vmem [thread:$0]  %s14_s8, 32, %s16_s10, [#allocation3]  }
   0x4   :  { %108 = dma.done.wait [#allocation3], 32  }
   0x5   :  { %109 = vsyncadd [#allocation3], 4294967264  ;;  %vm24_vm0 = vcmask 1041408   ;;  %v23_v0 = vld [vmem:[#allocation2] sm:$0x3]  ;;  %s113_s11 = smov [#allocation5]  }
   0x6   :  { %v25_v1 = vsel %vm24_vm0, %v23_v0, 0.0  ;;  %s44_s12 = sshll.u32 %s113_s11, 4  ;;  %s46_s16 = sshll.u32 %s131_s1, 4  ;;  %s45_s12 = int_to_ptr.vmem [resolvable:$true] %s44_s12  ;;  %s47_s16 = int_to_ptr.hbm [resolvable:$true] %s46_s16 }
   0x7   :  { %26 = vadd.xlane.f32.xlu0 %v25_v1 }
  0x7a   :  { %v27_v2 = vpop.xlane.xlu0 %26 }
  0x7b   :  { %v28_v3 = vrot.slane %v27_v2, 4 }
  0x7d   :  { %v29_v4 = vadd.f32 %v28_v3, %v27_v2 }
  0x7f   :  { %v30_v5 = vrot.slane %v29_v4, 2 }
  0x81   :  { %v31_v6 = vadd.f32 %v30_v5, %v29_v4 }
  0x83   :  { %v32_v7 = vrot.slane %v31_v6, 1 }
  0x85   :  { %v33_v8 = vadd.f32 %v32_v7, %v31_v6 }
  0x87   :  { %56 = vpush %v33_v8 }
  0xb8   :  { %s57_s0 = spop %56 }
  0xb9   :  { %s35_s13 = smul.f32 0.00390625, %s57_s0 }
  0xbb   :  { %v36_v9 = vstv %s35_s13 }
  0xbc   :  { %v37_v10 = vsub.f32 %v23_v0, %v36_v9 }
  0xbe   :  { %38 = vst [vmem:[#allocation5] sm:$0x3] %v37_v10 }
  0xbf   :  { %49 = dma.vmem_to_hbm [thread:$0]  %s45_s12, 32, %s47_s16, [#allocation4]  }
  0xc0   :  { %110 = dma.done.wait [#allocation4], 32  }
  0xc1   :  { %111 = vsyncadd [#allocation4], 4294967264 }
  0xc2   :  { %54 = vsyncpa [#allocation3], 1 }
  0xc3   :  { %55 = vsyncpa [#allocation4], 1 }

</bundles_post_ra>
